<compile_context>
chip_gen: v6e
topology: v6e:2x2x1
jax: 0.10.0
libtpu: 0.0.40
codegen_flags: <defaults>
</compile_context>

<pallas_src>
import jax
import jax.numpy as jnp
from jax.experimental import pallas as pl
from jax.experimental.pallas import tpu as pltpu

EMB_DIM = 3
VOCAB = 8
SEQ = 2            # Model_1.linear1 has in_features=2, so the sequence length must be 2
LANES = 128
CHUNK_ROWS = 8             # one (8,128) f32 vreg per intermediate slab
BASE = CHUNK_ROWS * LANES  # 1024 elements = smallest batch tile


def model3_kernel(idx_ref,                      # VMEM (2, R, 128) int32
                  emb_ref, w1_ref, b1_ref,      # SMEM (8,3), (2,2), (2,)
                  c0_ref, c1_ref, bc_ref,       # SMEM (3,), (3,), (1,)
                  out_ref):                     # VMEM (R, 128) f32
    R = out_ref.shape[0]
    n_chunks = R // CHUNK_ROWS
    cshape = (CHUNK_ROWS, LANES)

    # Hoist every SMEM-scalar broadcast ONCE per grid step (JAX does not CSE
    # broadcast_in_dim; leaving these inline would re-splat per chunk).
    Eb = [[jnp.full(cshape, emb_ref[v, d], jnp.float32) for d in range(EMB_DIM)]
          for v in range(VOCAB)]
    W1b = [[jnp.full(cshape, w1_ref[j, k], jnp.float32) for k in range(SEQ)]
           for j in range(SEQ)]
    B1b = [jnp.full(cshape, b1_ref[j], jnp.float32) for j in range(SEQ)]
    C0b = [jnp.full(cshape, c0_ref[d], jnp.float32) for d in range(EMB_DIM)]
    C1b = [jnp.full(cshape, c1_ref[d], jnp.float32) for d in range(EMB_DIM)]
    BCb = jnp.full(cshape, bc_ref[0], jnp.float32)

    def gather(idx):
        # compare-once + nested-select embedding gather (7 cmp + 7 selects per dim),
        # pure VPU, no MXU.  Out-of-range ids (>=8 or <0) fall through to row 7
        # (inputs are assumed in [0, 8), matching nn.Embedding's contract).
        cmps = [idx == v for v in range(VOCAB - 1)]
        es = []
        for d in range(EMB_DIM):
            acc = Eb[VOCAB - 1][d]
            for v in range(VOCAB - 2, -1, -1):
                acc = jnp.where(cmps[v], Eb[v][d], acc)
            es.append(acc)
        return es

    # Strip-mine the block over (8,128) sublane chunks with fully static offsets.
    # (Static Python for == lax.fori_loop(..., unroll=True) at trace level; per-chunk
    # live set stays well under 64 vregs so the VALU slot remains the bottleneck.)
    for c in range(n_chunks):
        r0 = c * CHUNK_ROWS
        idx0 = idx_ref[0, pl.ds(r0, CHUNK_ROWS), :]   # (8,128) token ids, position 0
        idx1 = idx_ref[1, pl.ds(r0, CHUNK_ROWS), :]   # (8,128) token ids, position 1
        e0 = gather(idx0)
        e1 = gather(idx1)

        # After transpose(1,2) the seq axis is the feature axis of linear1:
        #   h_j[d] = sigmoid(e0[d]*W1[j,0] + e1[d]*W1[j,1] + b1[j])      (EUP sigmoid)
        #   y      = sum_d (h_0[d]*C0[d] + h_1[d]*C1[d]) + Bc            (folded lin2/lin3)
        y = BCb
        for d in range(EMB_DIM):
            h0 = jax.nn.sigmoid(e0[d] * W1b[0][0] + e1[d] * W1b[0][1] + B1b[0])
            h1 = jax.nn.sigmoid(e0[d] * W1b[1][0] + e1[d] * W1b[1][1] + B1b[1])
            y = y + h0 * C0b[d] + h1 * C1b[d]

        out_ref[pl.ds(r0, CHUNK_ROWS), :] = y         # lane+sublane dense unmasked store


def _round_up(x, m):
    return (x + m - 1) // m * m


def model3_forward(x_idx, params, *, tile_b=32768):
    """x_idx: (B, 2) int32 token ids in [0, 8). Returns (B,) f32."""
    emb_w, w1, b1, w2, b2, w3, b3 = params
    B = x_idx.shape[0]
    assert x_idx.shape[1] == SEQ
    assert tile_b % BASE == 0, "tile_b must be a multiple of 1024 (an (8,128) tile)"

    B_pad = _round_up(B, BASE)
    n_base = B_pad // BASE                        # number of (8,128) base tiles
    bps = min(tile_b // BASE, n_base)             # base tiles per grid step
    while n_base % bps:                           # keep grid * block == padded batch
        bps -= 1
    # Keep >= 2 grid steps so v7x's two TensorCores both get work (one extra cheap
    # step on single-TC v5e/v6e is negligible).
    if n_base // bps < 2 and n_base >= 2:
        bps = n_base // 2
        while n_base % bps:
            bps -= 1
    TB = bps * BASE
    R = TB // LANES
    R_total = B_pad // LANES
    grid = (n_base // bps,)

    # Batch laid out sublane+lane dense: (2, R_total, 128); padded lanes read token 0
    # (harmless, sliced off below).
    idx_t = jnp.pad(x_idx.astype(jnp.int32).T, ((0, 0), (0, B_pad - B)))
    idx_t = idx_t.reshape(SEQ, R_total, LANES)

    # Fold linear2/linear3 into per-dim constants: y = sum_d h0*C0[d] + h1*C1[d] + Bc.
    w2f = jnp.reshape(w2, (SEQ,)).astype(jnp.float32)
    w3f = jnp.reshape(w3, (EMB_DIM,)).astype(jnp.float32)
    c0 = (w2f[0] * w3f).astype(jnp.float32)                       # (3,)
    c1 = (w2f[1] * w3f).astype(jnp.float32)                       # (3,)
    bc = (jnp.reshape(b2, ()).astype(jnp.float32) * jnp.sum(w3f)
          + jnp.reshape(b3, ()).astype(jnp.float32)).reshape(1)   # (1,)

    smem = pl.BlockSpec(memory_space=pltpu.MemorySpace.SMEM)

    out = pl.pallas_call(
        model3_kernel,
        out_shape=jax.ShapeDtypeStruct((R_total, LANES), jnp.float32),
        grid=grid,
        in_specs=[
            pl.BlockSpec((SEQ, R, LANES), lambda i: (0, i, 0)),   # token ids, dense
            smem,   # emb (8, 3)
            smem,   # w1  (2, 2)
            smem,   # b1  (2,)
            smem,   # c0  (3,)
            smem,   # c1  (3,)
            smem,   # bc  (1,)
        ],
        out_specs=pl.BlockSpec((R, LANES), lambda i: (i, 0)),
        compiler_params=pltpu.CompilerParams(
            dimension_semantics=("parallel",)),
    )(
        idx_t,
        emb_w.astype(jnp.float32),
        w1.astype(jnp.float32),
        b1.astype(jnp.float32),
        c0, c1, bc,
    )
    # TODO(synk): for B == 1 PyTorch's final .squeeze() returns a 0-d scalar; we keep (B,).
    return out.reshape(B_pad)[:B]


def init_params(key):
    """Deterministic parameter init mirroring Model_3.__init__ shapes."""
    k_emb, k_w1, k_b1, k_w2, k_b2, k_w3, k_b3 = jax.random.split(key, 7)
    # Embedding(8, 3), weights ~ U(0, 1)
    emb_w = jax.random.uniform(k_emb, (VOCAB, EMB_DIM), minval=0.0, maxval=1.0)
    # Linear(2, 2)
    lim1 = 1.0 / jnp.sqrt(2.0)
    w1 = jax.random.uniform(k_w1, (2, 2), minval=-lim1, maxval=lim1)
    b1 = jax.random.uniform(k_b1, (2,), minval=-lim1, maxval=lim1)
    # Linear(2, 1)
    w2 = jax.random.uniform(k_w2, (1, 2), minval=-lim1, maxval=lim1)
    b2 = jax.random.uniform(k_b2, (1,), minval=-lim1, maxval=lim1)
    # Linear(3, 1): weights ~ U(0, 8), bias default
    lim3 = 1.0 / jnp.sqrt(3.0)
    w3 = jax.random.uniform(k_w3, (1, EMB_DIM), minval=0.0, maxval=8.0)
    b3 = jax.random.uniform(k_b3, (1,), minval=-lim3, maxval=lim3)
    return emb_w, w1, b1, w2, b2, w3, b3


def model3_reference(x_idx, params):
    """Pure-JAX reference matching the PyTorch forward, for verification."""
    emb_w, w1, b1, w2, b2, w3, b3 = params
    e = emb_w[x_idx]                         # (B, 2, 3)
    e = jnp.swapaxes(e, 1, 2)                # (B, 3, 2)
    h = jax.nn.sigmoid(e @ w1.T + b1)        # (B, 3, 2)
    v = (h @ w2.T + b2)[..., 0]              # (B, 3)
    y = (v @ w3.T + b3)[..., 0]              # (B,)
    return y


if __name__ == "__main__":
    key = jax.random.PRNGKey(0)
    k_params, k_x = jax.random.split(key)
    params = init_params(k_params)

    # small demo batch
    B = 8
    x_idx = jax.random.randint(k_x, (B, SEQ), minval=0, maxval=VOCAB, dtype=jnp.int32)
    y = jax.block_until_ready(model3_forward(x_idx, params))
    y_ref = model3_reference(x_idx, params)
    assert y.shape == (B,), y.shape
    assert jnp.allclose(y, y_ref, atol=1e-5, rtol=1e-5), (y, y_ref)

    # multi-grid-step path (exercises the divisor fallback and small tiles)
    B2 = 2500
    x2 = jax.random.randint(jax.random.PRNGKey(7), (B2, SEQ), 0, VOCAB, dtype=jnp.int32)
    y2 = jax.block_until_ready(model3_forward(x2, params, tile_b=2048))
    assert jnp.allclose(y2, model3_reference(x2, params), atol=1e-5, rtol=1e-5)

    # default large tile; exercises the ">= 2 grid steps" cap
    B3 = 4096
    x3 = jax.random.randint(jax.random.PRNGKey(11), (B3, SEQ), 0, VOCAB, dtype=jnp.int32)
    y3 = jax.block_until_ready(model3_forward(x3, params))
    assert jnp.allclose(y3, model3_reference(x3, params), atol=1e-5, rtol=1e-5)

    print("KERNEL_OK")
</pallas_src>

<mosaic_0001>
module attributes {stable_mosaic.version = 11 : i64} {
  func.func @model3_kernel(%arg0: i32, %arg1: memref<2x8x128xi32, #tpu.memory_space<vmem>>, %arg2: memref<8x3xf32, #tpu.memory_space<smem>>, %arg3: memref<2x2xf32, #tpu.memory_space<smem>>, %arg4: memref<2xf32, #tpu.memory_space<smem>>, %arg5: memref<3xf32, #tpu.memory_space<smem>>, %arg6: memref<3xf32, #tpu.memory_space<smem>>, %arg7: memref<1xf32, #tpu.memory_space<smem>>, %arg8: memref<8x128xf32, #tpu.memory_space<vmem>>) attributes {dimension_semantics = [#tpu.dimension_semantics<parallel>], iteration_bounds = array<i64: 1>, scalar_prefetch = 0 : i64, scratch_operands = 0 : i64, tpu.core_type = #tpu.core_type<tc>, window_params = [{transform_indices = @transform_0, window_bounds = array<i64: 2, 8, 128>}, {transform_indices = @transform_1, window_bounds = array<i64: 8, 3>}, {transform_indices = @transform_2, window_bounds = array<i64: 2, 2>}, {transform_indices = @transform_3, window_bounds = array<i64: 2>}, {transform_indices = @transform_4, window_bounds = array<i64: 3>}, {transform_indices = @transform_5, window_bounds = array<i64: 3>}, {transform_indices = @transform_6, window_bounds = array<i64: 1>}, {transform_indices = @transform_7, window_bounds = array<i64: 8, 128>}]} {
    %c0 = arith.constant 0 : index
    %c0_0 = arith.constant 0 : index
    %0 = memref.load %arg2[%c0, %c0_0] : memref<8x3xf32, #tpu.memory_space<smem>>
    %1 = vector.broadcast %0 : f32 to vector<8x128xf32>
    %c0_1 = arith.constant 0 : index
    %c1 = arith.constant 1 : index
    %2 = memref.load %arg2[%c0_1, %c1] : memref<8x3xf32, #tpu.memory_space<smem>>
    %3 = vector.broadcast %2 : f32 to vector<8x128xf32>
    %c0_2 = arith.constant 0 : index
    %c2 = arith.constant 2 : index
    %4 = memref.load %arg2[%c0_2, %c2] : memref<8x3xf32, #tpu.memory_space<smem>>
    %5 = vector.broadcast %4 : f32 to vector<8x128xf32>
    %c1_3 = arith.constant 1 : index
    %c0_4 = arith.constant 0 : index
    %6 = memref.load %arg2[%c1_3, %c0_4] : memref<8x3xf32, #tpu.memory_space<smem>>
    %7 = vector.broadcast %6 : f32 to vector<8x128xf32>
    %c1_5 = arith.constant 1 : index
    %c1_6 = arith.constant 1 : index
    %8 = memref.load %arg2[%c1_5, %c1_6] : memref<8x3xf32, #tpu.memory_space<smem>>
    %9 = vector.broadcast %8 : f32 to vector<8x128xf32>
    %c1_7 = arith.constant 1 : index
    %c2_8 = arith.constant 2 : index
    %10 = memref.load %arg2[%c1_7, %c2_8] : memref<8x3xf32, #tpu.memory_space<smem>>
    %11 = vector.broadcast %10 : f32 to vector<8x128xf32>
    %c2_9 = arith.constant 2 : index
    %c0_10 = arith.constant 0 : index
    %12 = memref.load %arg2[%c2_9, %c0_10] : memref<8x3xf32, #tpu.memory_space<smem>>
    %13 = vector.broadcast %12 : f32 to vector<8x128xf32>
    %c2_11 = arith.constant 2 : index
    %c1_12 = arith.constant 1 : index
    %14 = memref.load %arg2[%c2_11, %c1_12] : memref<8x3xf32, #tpu.memory_space<smem>>
    %15 = vector.broadcast %14 : f32 to vector<8x128xf32>
    %c2_13 = arith.constant 2 : index
    %c2_14 = arith.constant 2 : index
    %16 = memref.load %arg2[%c2_13, %c2_14] : memref<8x3xf32, #tpu.memory_space<smem>>
    %17 = vector.broadcast %16 : f32 to vector<8x128xf32>
    %c3 = arith.constant 3 : index
    %c0_15 = arith.constant 0 : index
    %18 = memref.load %arg2[%c3, %c0_15] : memref<8x3xf32, #tpu.memory_space<smem>>
    %19 = vector.broadcast %18 : f32 to vector<8x128xf32>
    %c3_16 = arith.constant 3 : index
    %c1_17 = arith.constant 1 : index
    %20 = memref.load %arg2[%c3_16, %c1_17] : memref<8x3xf32, #tpu.memory_space<smem>>
    %21 = vector.broadcast %20 : f32 to vector<8x128xf32>
    %c3_18 = arith.constant 3 : index
    %c2_19 = arith.constant 2 : index
    %22 = memref.load %arg2[%c3_18, %c2_19] : memref<8x3xf32, #tpu.memory_space<smem>>
    %23 = vector.broadcast %22 : f32 to vector<8x128xf32>
    %c4 = arith.constant 4 : index
    %c0_20 = arith.constant 0 : index
    %24 = memref.load %arg2[%c4, %c0_20] : memref<8x3xf32, #tpu.memory_space<smem>>
    %25 = vector.broadcast %24 : f32 to vector<8x128xf32>
    %c4_21 = arith.constant 4 : index
    %c1_22 = arith.constant 1 : index
    %26 = memref.load %arg2[%c4_21, %c1_22] : memref<8x3xf32, #tpu.memory_space<smem>>
    %27 = vector.broadcast %26 : f32 to vector<8x128xf32>
    %c4_23 = arith.constant 4 : index
    %c2_24 = arith.constant 2 : index
    %28 = memref.load %arg2[%c4_23, %c2_24] : memref<8x3xf32, #tpu.memory_space<smem>>
    %29 = vector.broadcast %28 : f32 to vector<8x128xf32>
    %c5 = arith.constant 5 : index
    %c0_25 = arith.constant 0 : index
    %30 = memref.load %arg2[%c5, %c0_25] : memref<8x3xf32, #tpu.memory_space<smem>>
    %31 = vector.broadcast %30 : f32 to vector<8x128xf32>
    %c5_26 = arith.constant 5 : index
    %c1_27 = arith.constant 1 : index
    %32 = memref.load %arg2[%c5_26, %c1_27] : memref<8x3xf32, #tpu.memory_space<smem>>
    %33 = vector.broadcast %32 : f32 to vector<8x128xf32>
    %c5_28 = arith.constant 5 : index
    %c2_29 = arith.constant 2 : index
    %34 = memref.load %arg2[%c5_28, %c2_29] : memref<8x3xf32, #tpu.memory_space<smem>>
    %35 = vector.broadcast %34 : f32 to vector<8x128xf32>
    %c6 = arith.constant 6 : index
    %c0_30 = arith.constant 0 : index
    %36 = memref.load %arg2[%c6, %c0_30] : memref<8x3xf32, #tpu.memory_space<smem>>
    %37 = vector.broadcast %36 : f32 to vector<8x128xf32>
    %c6_31 = arith.constant 6 : index
    %c1_32 = arith.constant 1 : index
    %38 = memref.load %arg2[%c6_31, %c1_32] : memref<8x3xf32, #tpu.memory_space<smem>>
    %39 = vector.broadcast %38 : f32 to vector<8x128xf32>
    %c6_33 = arith.constant 6 : index
    %c2_34 = arith.constant 2 : index
    %40 = memref.load %arg2[%c6_33, %c2_34] : memref<8x3xf32, #tpu.memory_space<smem>>
    %41 = vector.broadcast %40 : f32 to vector<8x128xf32>
    %c7 = arith.constant 7 : index
    %c0_35 = arith.constant 0 : index
    %42 = memref.load %arg2[%c7, %c0_35] : memref<8x3xf32, #tpu.memory_space<smem>>
    %43 = vector.broadcast %42 : f32 to vector<8x128xf32>
    %c7_36 = arith.constant 7 : index
    %c1_37 = arith.constant 1 : index
    %44 = memref.load %arg2[%c7_36, %c1_37] : memref<8x3xf32, #tpu.memory_space<smem>>
    %45 = vector.broadcast %44 : f32 to vector<8x128xf32>
    %c7_38 = arith.constant 7 : index
    %c2_39 = arith.constant 2 : index
    %46 = memref.load %arg2[%c7_38, %c2_39] : memref<8x3xf32, #tpu.memory_space<smem>>
    %47 = vector.broadcast %46 : f32 to vector<8x128xf32>
    %c0_40 = arith.constant 0 : index
    %c0_41 = arith.constant 0 : index
    %48 = memref.load %arg3[%c0_40, %c0_41] : memref<2x2xf32, #tpu.memory_space<smem>>
    %49 = vector.broadcast %48 : f32 to vector<8x128xf32>
    %c0_42 = arith.constant 0 : index
    %c1_43 = arith.constant 1 : index
    %50 = memref.load %arg3[%c0_42, %c1_43] : memref<2x2xf32, #tpu.memory_space<smem>>
    %51 = vector.broadcast %50 : f32 to vector<8x128xf32>
    %c1_44 = arith.constant 1 : index
    %c0_45 = arith.constant 0 : index
    %52 = memref.load %arg3[%c1_44, %c0_45] : memref<2x2xf32, #tpu.memory_space<smem>>
    %53 = vector.broadcast %52 : f32 to vector<8x128xf32>
    %c1_46 = arith.constant 1 : index
    %c1_47 = arith.constant 1 : index
    %54 = memref.load %arg3[%c1_46, %c1_47] : memref<2x2xf32, #tpu.memory_space<smem>>
    %55 = vector.broadcast %54 : f32 to vector<8x128xf32>
    %c0_48 = arith.constant 0 : index
    %56 = memref.load %arg4[%c0_48] : memref<2xf32, #tpu.memory_space<smem>>
    %57 = vector.broadcast %56 : f32 to vector<8x128xf32>
    %c1_49 = arith.constant 1 : index
    %58 = memref.load %arg4[%c1_49] : memref<2xf32, #tpu.memory_space<smem>>
    %59 = vector.broadcast %58 : f32 to vector<8x128xf32>
    %c0_50 = arith.constant 0 : index
    %60 = memref.load %arg5[%c0_50] : memref<3xf32, #tpu.memory_space<smem>>
    %61 = vector.broadcast %60 : f32 to vector<8x128xf32>
    %c1_51 = arith.constant 1 : index
    %62 = memref.load %arg5[%c1_51] : memref<3xf32, #tpu.memory_space<smem>>
    %63 = vector.broadcast %62 : f32 to vector<8x128xf32>
    %c2_52 = arith.constant 2 : index
    %64 = memref.load %arg5[%c2_52] : memref<3xf32, #tpu.memory_space<smem>>
    %65 = vector.broadcast %64 : f32 to vector<8x128xf32>
    %c0_53 = arith.constant 0 : index
    %66 = memref.load %arg6[%c0_53] : memref<3xf32, #tpu.memory_space<smem>>
    %67 = vector.broadcast %66 : f32 to vector<8x128xf32>
    %c1_54 = arith.constant 1 : index
    %68 = memref.load %arg6[%c1_54] : memref<3xf32, #tpu.memory_space<smem>>
    %69 = vector.broadcast %68 : f32 to vector<8x128xf32>
    %c2_55 = arith.constant 2 : index
    %70 = memref.load %arg6[%c2_55] : memref<3xf32, #tpu.memory_space<smem>>
    %71 = vector.broadcast %70 : f32 to vector<8x128xf32>
    %c0_56 = arith.constant 0 : index
    %72 = memref.load %arg7[%c0_56] : memref<1xf32, #tpu.memory_space<smem>>
    %73 = vector.broadcast %72 : f32 to vector<8x128xf32>
    %c0_57 = arith.constant 0 : index
    %c0_58 = arith.constant 0 : index
    %c0_59 = arith.constant 0 : index
    %74 = vector.load %arg1[%c0_57, %c0_58, %c0_59] : memref<2x8x128xi32, #tpu.memory_space<vmem>>, vector<1x8x128xi32>
    %75 = vector.shape_cast %74 : vector<1x8x128xi32> to vector<8x128xi32>
    %c1_60 = arith.constant 1 : index
    %c0_61 = arith.constant 0 : index
    %c0_62 = arith.constant 0 : index
    %76 = vector.load %arg1[%c1_60, %c0_61, %c0_62] : memref<2x8x128xi32, #tpu.memory_space<vmem>>, vector<1x8x128xi32>
    %77 = vector.shape_cast %76 : vector<1x8x128xi32> to vector<8x128xi32>
    %c0_i32 = arith.constant 0 : i32
    %78 = vector.broadcast %c0_i32 : i32 to vector<8x128xi32>
    %79 = arith.cmpi eq, %75, %78 : vector<8x128xi32>
    %c1_i32 = arith.constant 1 : i32
    %80 = vector.broadcast %c1_i32 : i32 to vector<8x128xi32>
    %81 = arith.cmpi eq, %75, %80 : vector<8x128xi32>
    %c2_i32 = arith.constant 2 : i32
    %82 = vector.broadcast %c2_i32 : i32 to vector<8x128xi32>
    %83 = arith.cmpi eq, %75, %82 : vector<8x128xi32>
    %c3_i32 = arith.constant 3 : i32
    %84 = vector.broadcast %c3_i32 : i32 to vector<8x128xi32>
    %85 = arith.cmpi eq, %75, %84 : vector<8x128xi32>
    %c4_i32 = arith.constant 4 : i32
    %86 = vector.broadcast %c4_i32 : i32 to vector<8x128xi32>
    %87 = arith.cmpi eq, %75, %86 : vector<8x128xi32>
    %c5_i32 = arith.constant 5 : i32
    %88 = vector.broadcast %c5_i32 : i32 to vector<8x128xi32>
    %89 = arith.cmpi eq, %75, %88 : vector<8x128xi32>
    %c6_i32 = arith.constant 6 : i32
    %90 = vector.broadcast %c6_i32 : i32 to vector<8x128xi32>
    %91 = arith.cmpi eq, %75, %90 : vector<8x128xi32>
    %92 = arith.select %91, %37, %43 : vector<8x128xi1>, vector<8x128xf32>
    %93 = arith.select %89, %31, %92 : vector<8x128xi1>, vector<8x128xf32>
    %94 = arith.select %87, %25, %93 : vector<8x128xi1>, vector<8x128xf32>
    %95 = arith.select %85, %19, %94 : vector<8x128xi1>, vector<8x128xf32>
    %96 = arith.select %83, %13, %95 : vector<8x128xi1>, vector<8x128xf32>
    %97 = arith.select %81, %7, %96 : vector<8x128xi1>, vector<8x128xf32>
    %98 = arith.select %79, %1, %97 : vector<8x128xi1>, vector<8x128xf32>
    %99 = arith.select %91, %39, %45 : vector<8x128xi1>, vector<8x128xf32>
    %100 = arith.select %89, %33, %99 : vector<8x128xi1>, vector<8x128xf32>
    %101 = arith.select %87, %27, %100 : vector<8x128xi1>, vector<8x128xf32>
    %102 = arith.select %85, %21, %101 : vector<8x128xi1>, vector<8x128xf32>
    %103 = arith.select %83, %15, %102 : vector<8x128xi1>, vector<8x128xf32>
    %104 = arith.select %81, %9, %103 : vector<8x128xi1>, vector<8x128xf32>
    %105 = arith.select %79, %3, %104 : vector<8x128xi1>, vector<8x128xf32>
    %106 = arith.select %91, %41, %47 : vector<8x128xi1>, vector<8x128xf32>
    %107 = arith.select %89, %35, %106 : vector<8x128xi1>, vector<8x128xf32>
    %108 = arith.select %87, %29, %107 : vector<8x128xi1>, vector<8x128xf32>
    %109 = arith.select %85, %23, %108 : vector<8x128xi1>, vector<8x128xf32>
    %110 = arith.select %83, %17, %109 : vector<8x128xi1>, vector<8x128xf32>
    %111 = arith.select %81, %11, %110 : vector<8x128xi1>, vector<8x128xf32>
    %112 = arith.select %79, %5, %111 : vector<8x128xi1>, vector<8x128xf32>
    %c0_i32_63 = arith.constant 0 : i32
    %113 = vector.broadcast %c0_i32_63 : i32 to vector<8x128xi32>
    %114 = arith.cmpi eq, %77, %113 : vector<8x128xi32>
    %c1_i32_64 = arith.constant 1 : i32
    %115 = vector.broadcast %c1_i32_64 : i32 to vector<8x128xi32>
    %116 = arith.cmpi eq, %77, %115 : vector<8x128xi32>
    %c2_i32_65 = arith.constant 2 : i32
    %117 = vector.broadcast %c2_i32_65 : i32 to vector<8x128xi32>
    %118 = arith.cmpi eq, %77, %117 : vector<8x128xi32>
    %c3_i32_66 = arith.constant 3 : i32
    %119 = vector.broadcast %c3_i32_66 : i32 to vector<8x128xi32>
    %120 = arith.cmpi eq, %77, %119 : vector<8x128xi32>
    %c4_i32_67 = arith.constant 4 : i32
    %121 = vector.broadcast %c4_i32_67 : i32 to vector<8x128xi32>
    %122 = arith.cmpi eq, %77, %121 : vector<8x128xi32>
    %c5_i32_68 = arith.constant 5 : i32
    %123 = vector.broadcast %c5_i32_68 : i32 to vector<8x128xi32>
    %124 = arith.cmpi eq, %77, %123 : vector<8x128xi32>
    %c6_i32_69 = arith.constant 6 : i32
    %125 = vector.broadcast %c6_i32_69 : i32 to vector<8x128xi32>
    %126 = arith.cmpi eq, %77, %125 : vector<8x128xi32>
    %127 = arith.select %126, %37, %43 : vector<8x128xi1>, vector<8x128xf32>
    %128 = arith.select %124, %31, %127 : vector<8x128xi1>, vector<8x128xf32>
    %129 = arith.select %122, %25, %128 : vector<8x128xi1>, vector<8x128xf32>
    %130 = arith.select %120, %19, %129 : vector<8x128xi1>, vector<8x128xf32>
    %131 = arith.select %118, %13, %130 : vector<8x128xi1>, vector<8x128xf32>
    %132 = arith.select %116, %7, %131 : vector<8x128xi1>, vector<8x128xf32>
    %133 = arith.select %114, %1, %132 : vector<8x128xi1>, vector<8x128xf32>
    %134 = arith.select %126, %39, %45 : vector<8x128xi1>, vector<8x128xf32>
    %135 = arith.select %124, %33, %134 : vector<8x128xi1>, vector<8x128xf32>
    %136 = arith.select %122, %27, %135 : vector<8x128xi1>, vector<8x128xf32>
    %137 = arith.select %120, %21, %136 : vector<8x128xi1>, vector<8x128xf32>
    %138 = arith.select %118, %15, %137 : vector<8x128xi1>, vector<8x128xf32>
    %139 = arith.select %116, %9, %138 : vector<8x128xi1>, vector<8x128xf32>
    %140 = arith.select %114, %3, %139 : vector<8x128xi1>, vector<8x128xf32>
    %141 = arith.select %126, %41, %47 : vector<8x128xi1>, vector<8x128xf32>
    %142 = arith.select %124, %35, %141 : vector<8x128xi1>, vector<8x128xf32>
    %143 = arith.select %122, %29, %142 : vector<8x128xi1>, vector<8x128xf32>
    %144 = arith.select %120, %23, %143 : vector<8x128xi1>, vector<8x128xf32>
    %145 = arith.select %118, %17, %144 : vector<8x128xi1>, vector<8x128xf32>
    %146 = arith.select %116, %11, %145 : vector<8x128xi1>, vector<8x128xf32>
    %147 = arith.select %114, %5, %146 : vector<8x128xi1>, vector<8x128xf32>
    %148 = arith.mulf %98, %49 : vector<8x128xf32>
    %149 = arith.mulf %133, %51 : vector<8x128xf32>
    %150 = arith.addf %148, %149 : vector<8x128xf32>
    %151 = arith.addf %150, %57 : vector<8x128xf32>
    %152 = arith.negf %151 : vector<8x128xf32>
    %153 = math.exp %152 : vector<8x128xf32>
    %cst = arith.constant 1.000000e+00 : f32
    %154 = vector.broadcast %cst : f32 to vector<8x128xf32>
    %155 = arith.addf %154, %153 : vector<8x128xf32>
    %156 = arith.divf %154, %155 : vector<8x128xf32>
    %157 = arith.mulf %98, %53 : vector<8x128xf32>
    %158 = arith.mulf %133, %55 : vector<8x128xf32>
    %159 = arith.addf %157, %158 : vector<8x128xf32>
    %160 = arith.addf %159, %59 : vector<8x128xf32>
    %161 = arith.negf %160 : vector<8x128xf32>
    %162 = math.exp %161 : vector<8x128xf32>
    %cst_70 = arith.constant 1.000000e+00 : f32
    %163 = vector.broadcast %cst_70 : f32 to vector<8x128xf32>
    %164 = arith.addf %163, %162 : vector<8x128xf32>
    %165 = arith.divf %163, %164 : vector<8x128xf32>
    %166 = arith.mulf %156, %61 : vector<8x128xf32>
    %167 = arith.addf %73, %166 : vector<8x128xf32>
    %168 = arith.mulf %165, %67 : vector<8x128xf32>
    %169 = arith.addf %167, %168 : vector<8x128xf32>
    %170 = arith.mulf %105, %49 : vector<8x128xf32>
    %171 = arith.mulf %140, %51 : vector<8x128xf32>
    %172 = arith.addf %170, %171 : vector<8x128xf32>
    %173 = arith.addf %172, %57 : vector<8x128xf32>
    %174 = arith.negf %173 : vector<8x128xf32>
    %175 = math.exp %174 : vector<8x128xf32>
    %cst_71 = arith.constant 1.000000e+00 : f32
    %176 = vector.broadcast %cst_71 : f32 to vector<8x128xf32>
    %177 = arith.addf %176, %175 : vector<8x128xf32>
    %178 = arith.divf %176, %177 : vector<8x128xf32>
    %179 = arith.mulf %105, %53 : vector<8x128xf32>
    %180 = arith.mulf %140, %55 : vector<8x128xf32>
    %181 = arith.addf %179, %180 : vector<8x128xf32>
    %182 = arith.addf %181, %59 : vector<8x128xf32>
    %183 = arith.negf %182 : vector<8x128xf32>
    %184 = math.exp %183 : vector<8x128xf32>
    %cst_72 = arith.constant 1.000000e+00 : f32
    %185 = vector.broadcast %cst_72 : f32 to vector<8x128xf32>
    %186 = arith.addf %185, %184 : vector<8x128xf32>
    %187 = arith.divf %185, %186 : vector<8x128xf32>
    %188 = arith.mulf %178, %63 : vector<8x128xf32>
    %189 = arith.addf %169, %188 : vector<8x128xf32>
    %190 = arith.mulf %187, %69 : vector<8x128xf32>
    %191 = arith.addf %189, %190 : vector<8x128xf32>
    %192 = arith.mulf %112, %49 : vector<8x128xf32>
    %193 = arith.mulf %147, %51 : vector<8x128xf32>
    %194 = arith.addf %192, %193 : vector<8x128xf32>
    %195 = arith.addf %194, %57 : vector<8x128xf32>
    %196 = arith.negf %195 : vector<8x128xf32>
    %197 = math.exp %196 : vector<8x128xf32>
    %cst_73 = arith.constant 1.000000e+00 : f32
    %198 = vector.broadcast %cst_73 : f32 to vector<8x128xf32>
    %199 = arith.addf %198, %197 : vector<8x128xf32>
    %200 = arith.divf %198, %199 : vector<8x128xf32>
    %201 = arith.mulf %112, %53 : vector<8x128xf32>
    %202 = arith.mulf %147, %55 : vector<8x128xf32>
    %203 = arith.addf %201, %202 : vector<8x128xf32>
    %204 = arith.addf %203, %59 : vector<8x128xf32>
    %205 = arith.negf %204 : vector<8x128xf32>
    %206 = math.exp %205 : vector<8x128xf32>
    %cst_74 = arith.constant 1.000000e+00 : f32
    %207 = vector.broadcast %cst_74 : f32 to vector<8x128xf32>
    %208 = arith.addf %207, %206 : vector<8x128xf32>
    %209 = arith.divf %207, %208 : vector<8x128xf32>
    %210 = arith.mulf %200, %65 : vector<8x128xf32>
    %211 = arith.addf %191, %210 : vector<8x128xf32>
    %212 = arith.mulf %209, %71 : vector<8x128xf32>
    %213 = arith.addf %211, %212 : vector<8x128xf32>
    %c0_75 = arith.constant 0 : index
    %c0_76 = arith.constant 0 : index
    %214 = vector.load %arg8[%c0_75, %c0_76] : memref<8x128xf32, #tpu.memory_space<vmem>>, vector<8x128xf32>
    tpu.vector_store %arg8[%c0_75, %c0_76], %213 {strides = array<i32>} : memref<8x128xf32, #tpu.memory_space<vmem>>, vector<8x128xf32>,
    return
  }
  func.func @transform_0(%arg0: i32) -> (i32, i32, i32) {
    %c0_i32 = arith.constant 0 : i32
    %c0_i32_0 = arith.constant 0 : i32
    %c0_i32_1 = arith.constant 0 : i32
    return %c0_i32, %arg0, %c0_i32_0 : i32, i32, i32
  }
  func.func @transform_1(%arg0: i32) -> (i32, i32) {
    %c0_i32 = arith.constant 0 : i32
    %c0_i32_0 = arith.constant 0 : i32
    %c0_i32_1 = arith.constant 0 : i32
    return %c0_i32, %c0_i32_0 : i32, i32
  }
  func.func @transform_2(%arg0: i32) -> (i32, i32) {
    %c0_i32 = arith.constant 0 : i32
    %c0_i32_0 = arith.constant 0 : i32
    %c0_i32_1 = arith.constant 0 : i32
    return %c0_i32, %c0_i32_0 : i32, i32
  }
  func.func @transform_3(%arg0: i32) -> i32 {
    %c0_i32 = arith.constant 0 : i32
    %c0_i32_0 = arith.constant 0 : i32
    return %c0_i32 : i32
  }
  func.func @transform_4(%arg0: i32) -> i32 {
    %c0_i32 = arith.constant 0 : i32
    %c0_i32_0 = arith.constant 0 : i32
    return %c0_i32 : i32
  }
  func.func @transform_5(%arg0: i32) -> i32 {
    %c0_i32 = arith.constant 0 : i32
    %c0_i32_0 = arith.constant 0 : i32
    return %c0_i32 : i32
  }
  func.func @transform_6(%arg0: i32) -> i32 {
    %c0_i32 = arith.constant 0 : i32
    %c0_i32_0 = arith.constant 0 : i32
    return %c0_i32 : i32
  }
  func.func @transform_7(%arg0: i32) -> (i32, i32) {
    %c0_i32 = arith.constant 0 : i32
    %c0_i32_0 = arith.constant 0 : i32
    return %arg0, %c0_i32 : i32, i32
  }
}

</mosaic_0001>

<bundles_post_ra>
// kernel: tpu_custom_call.1
= control target key start
LH: loop header
LB: loop body
LE: loop exit
PB: predicated region body
PF: predicated region fallthrough
CT: control target
= control target key end

     0   :  { %13 = vsyncpa [#allocation4], 0  ;;  %s786_s0 = inlined_call_operand.hbm [shape: s32[2,8,128], index: 0, kind: input, shape index: {}]   ;;  %s787_s1 = inlined_call_operand.vmem [shape: f32[8,3], index: 1, kind: input, shape index: {}]   ;;  %s788_s2 = inlined_call_operand.vmem [shape: f32[2,2], index: 2, kind: input, shape index: {}]   ;;  %s789_s3 = inlined_call_operand.vmem [shape: f32[2], index: 3, kind: input, shape index: {}]   ;;  %s790_s4 = inlined_call_operand.vmem [shape: f32[3], index: 4, kind: input, shape index: {}]   ;;  %s791_s5 = inlined_call_operand.vmem [shape: f32[3], index: 5, kind: input, shape index: {}]   ;;  %s792_s6 = inlined_call_operand.<no memory space> [shape: f32[1], index: 6, kind: input, shape index: {}]   ;;  %s793_s7 = inlined_call_operand.hbm [shape: f32[8,128], index: 7, kind: output, shape index: {}]  }
   0x1   :  { %14 = vsyncpa [#allocation6], 0 }
   0x2   :  { %15 = vsyncpa [#allocation9], 0 }
   0x3   :  { %16 = vsyncpa [#allocation12], 0  ;;  %s46_s26 = sshll.u32 %s788_s2, 4  ;;  %s47_s26 = int_to_ptr.vmem [resolvable:$true] %s46_s26 }
   0x4   :  { %17 = vsyncpa [#allocation5], 0  ;;  %s66_s29 = sshll.u32 %s790_s4, 4  ;;  %s395_s30 = scalar_lea.vmem %s47_s26, 32  ;;  %s67_s29 = int_to_ptr.vmem [resolvable:$true] %s66_s29 }
   0x5   :  { %p396_p0 = scmp.ne.s32.totalorder %s47_s26, %s395_s30  ;;  %p400_p1 = scmp.lt.s32.totalorder %s47_s26, %s47_s26 }
   0x6   :  { %p401_p2 = scmp.lt.s32.totalorder %s395_s30, %s395_s30 }
   0x8   :  { %p402_p3 = por %p401_p2, %p400_p1 }
   0xa   :  { %p403_p4 = pnand %p402_p3, %p396_p0 }
   0xc   :  { %406 = shalt.err (!%p403_p4)
}
   0xd   :  { %s505_s8 = smov [#allocation8]   ;;  %s407_s9 = scalar_lea.vmem %s67_s29, 16 }
   0xe   :  { %49 = dma.vmem_to_smem %s47_s26, 32, %s505_s8, [#allocation9]  }
   0xf   :  { %p408_p5 = scmp.ne.s32.totalorder %s67_s29, %s407_s9  ;;  %p412_p6 = scmp.lt.s32.totalorder %s67_s29, %s67_s29 }
  0x10   :  { %p413_p7 = scmp.lt.s32.totalorder %s407_s9, %s407_s9 }
  0x12   :  { %p414_p8 = por %p413_p7, %p412_p6 }
  0x14   :  { %p415_p9 = pnand %p414_p8, %p408_p5 }
  0x16   :  { %418 = shalt.err (!%p415_p9)
}
  0x17   :  { %s506_s2 = smov [#allocation11]   ;;  %s507_s4 = smov [#allocation3]  }
  0x18   :  { %69 = dma.vmem_to_smem %s67_s29, 16, %s506_s2, [#allocation12]  }
  0x19   :  { %s23_s10 = sshll.u32 %s507_s4, 4  ;;  %s36_s13 = sshll.u32 %s787_s1, 4  ;;  %s24_s10 = int_to_ptr.vmem [resolvable:$true] %s23_s10  ;;  %s37_s13 = int_to_ptr.vmem [resolvable:$true] %s36_s13 }
  0x1a   :  { %s427_s14 = scalar_lea.vmem %s24_s10, 256  ;;  %p432_p11 = scmp.lt.s32.totalorder %s24_s10, %s24_s10 }
  0x1b   :  { %p428_p10 = scmp.ne.s32.totalorder %s24_s10, %s427_s14  ;;  %p433_p12 = scmp.lt.s32.totalorder %s427_s14, %s427_s14 }
  0x1d   :  { %p434_p13 = por %p433_p12, %p432_p11 }
  0x1f   :  { %p435_p0 = pnand %p434_p13, %p428_p10 }
  0x21   :  { %438 = shalt.err (!%p435_p0)
}
  0x22   :  { %s508_s15 = smov 128   ;;  %s509_s16 = smov 8  }
  0x23   :  { %29 = dma.hbm_to_vmem [thread:$0]  %s786_s0, 256, %s24_s10, [#allocation4], %s508_s15, %s508_s15, %s509_s16  }
  0x24   :  { %s439_s19 = scalar_lea.vmem %s37_s13, 128  ;;  %p444_p2 = scmp.lt.s32.totalorder %s37_s13, %s37_s13 }
  0x25   :  { %p440_p1 = scmp.ne.s32.totalorder %s37_s13, %s439_s19  ;;  %p445_p3 = scmp.lt.s32.totalorder %s439_s19, %s439_s19 }
  0x27   :  { %p446_p4 = por %p445_p3, %p444_p2 }
  0x29   :  { %p447_p5 = pnand %p446_p4, %p440_p1 }
  0x2b   :  { %450 = shalt.err (!%p447_p5)
}
  0x2c   :  { %s510_s1 = smov [#allocation7]   ;;  %s56_s22 = sshll.u32 %s789_s3, 4  ;;  %s57_s22 = int_to_ptr.vmem [resolvable:$true] %s56_s22 }
  0x2d   :  { %39 = dma.vmem_to_smem %s37_s13, 128, %s510_s1, [#allocation6]  }
  0x2e   :  { %s76_s25 = sshll.u32 %s791_s5, 4  ;;  %s451_s0 = scalar_lea.vmem %s57_s22, 16  ;;  %s77_s25 = int_to_ptr.vmem [resolvable:$true] %s76_s25 }
  0x2f   :  { %p452_p6 = scmp.ne.s32.totalorder %s57_s22, %s451_s0  ;;  %p456_p7 = scmp.lt.s32.totalorder %s57_s22, %s57_s22 }
  0x30   :  { %p457_p8 = scmp.lt.s32.totalorder %s451_s0, %s451_s0 }
  0x32   :  { %p458_p9 = por %p457_p8, %p456_p7 }
  0x34   :  { %p459_p10 = pnand %p458_p9, %p452_p6 }
  0x36   :  { %462 = shalt.err (!%p459_p10)
}
  0x37   :  { %s511_s26 = smov [#allocation10]   ;;  %s463_s27 = scalar_lea.vmem %s77_s25, 16 }
  0x38   :  { %59 = dma.vmem_to_smem %s57_s22, 16, %s511_s26, [#allocation9]  }
  0x39   :  { %p464_p11 = scmp.ne.s32.totalorder %s77_s25, %s463_s27  ;;  %p468_p12 = scmp.lt.s32.totalorder %s77_s25, %s77_s25 }
  0x3a   :  { %p469_p13 = scmp.lt.s32.totalorder %s463_s27, %s463_s27 }
  0x3c   :  { %p470_p0 = por %p469_p13, %p468_p12 }
  0x3e   :  { %p471_p1 = pnand %p470_p0, %p464_p11 }
  0x40   :  { %474 = shalt.err (!%p471_p1)
}
  0x41   :  { %s512_s3 = smov [#allocation13]  }
  0x42   :  { %79 = dma.vmem_to_smem %s77_s25, 16, %s512_s3, [#allocation12]  }
  0x43   :  { %495 = dma.done.wait [#allocation4], 256  }
  0x44   :  { %496 = vsyncadd [#allocation4], 4294967040 }
  0x45   :  { %497 = dma.done.wait [#allocation6], 128  }
  0x46   :  { %498 = vsyncadd [#allocation6], 4294967168 }
  0x47   :  { %499 = dma.done.wait [#allocation9], 48  }
  0x48   :  { %500 = vsyncadd [#allocation9], 4294967248 }
  0x49   :  { %501 = dma.done.wait [#allocation12], 32  }
  0x4a   :  { %502 = vsyncadd [#allocation12], 4294967264 }
  0x4b   :  { %100 = sfence }
  0x4c   :  { %s572_s5 = sld [smem:[#allocation7]]  ;;  %v614_v0 = vld [vmem:[#allocation3] sm:$0xff]  ;;  %v616_v1 = vld [vmem:[#allocation3 + $0x8] sm:$0xff] }
  0x4d   :  { %s574_s28 = sld [smem:[#allocation7 + $0x1]]  ;;  %vm179_vm0 = vcmp.eq.s32.totalorder %v614_v0, 1  ;;  %vm180_vm1 = vcmp.eq.s32.totalorder %v614_v0, 2  ;;  %vm181_vm2 = vcmp.eq.s32.totalorder %v614_v0, 3  ;;  %vm182_vm3 = vcmp.eq.s32.totalorder %v614_v0, 4 }
  0x4e   :  { %s576_s29 = sld [smem:[#allocation7 + $0x2]]  ;;  %vm183_vm4 = vcmp.eq.s32.totalorder %v614_v0, 5  ;;  %vm184_vm5 = vcmp.eq.s32.totalorder %v614_v0, 6  ;;  %vm211_vm6 = vcmp.eq.s32.totalorder %v616_v1, 5  ;;  %vm210_vm7 = vcmp.eq.s32.totalorder %v616_v1, 4 }
  0x4f   :  { %s578_s30 = sld [smem:[#allocation7 + $0x80]]  ;;  %vm212_vm8 = vcmp.eq.s32.totalorder %v616_v1, 6  ;;  %vm178_vm9 = vcmp.eq.s32.totalorder %v614_v0, 0  ;;  %vm209_vm10 = vcmp.eq.s32.totalorder %v616_v1, 3  ;;  %vm208_vm11 = vcmp.eq.s32.totalorder %v616_v1, 2 }
  0x50   :  { %s580_s8 = sld [smem:[#allocation7 + $0x81]]  ;;  %vm207_vm12 = vcmp.eq.s32.totalorder %v616_v1, 1  ;;  %vm206_vm13 = vcmp.eq.s32.totalorder %v616_v1, 0 }
  0x51   :  { %s582_s9 = sld [smem:[#allocation7 + $0x82]] }
  0x52   :  { %s584_s2 = sld [smem:[#allocation7 + $0x100]]  ;;  %v102_v2 = vstv %s572_s5 }
  0x53   :  { %s586_s4 = sld [smem:[#allocation7 + $0x101]]  ;;  %v104_v3 = vstv %s574_s28 }
  0x54   :  { %s588_s10 = sld [smem:[#allocation7 + $0x102]]  ;;  %v106_v37 = vstv %s576_s29 }
  0x55   :  { %s590_s11 = sld [smem:[#allocation7 + $0x180]]  ;;  %v108_v4 = vstv %s578_s30 }
  0x56   :  { %s592_s12 = sld [smem:[#allocation7 + $0x181]]  ;;  %v110_v38 = vstv %s580_s8 }
  0x57   :  { %s594_s13 = sld [smem:[#allocation7 + $0x182]]  ;;  %v112_v41 = vstv %s582_s9 }
  0x58   :  { %s596_s14 = sld [smem:[#allocation7 + $0x200]]  ;;  %v114_v5 = vstv %s584_s2 }
  0x59   :  { %s598_s15 = sld [smem:[#allocation7 + $0x201]]  ;;  %v116_v6 = vstv %s586_s4 }
  0x5a   :  { %s600_s16 = sld [smem:[#allocation7 + $0x202]]  ;;  %v118_v29 = vstv %s588_s10 }
  0x5b   :  { %s602_s17 = sld [smem:[#allocation7 + $0x280]]  ;;  %v120_v7 = vstv %s590_s11  ;;  %s513_s11 = smov [#allocation14]  }
  0x5c   :  { %s604_s18 = sld [smem:[#allocation7 + $0x281]]  ;;  %v122_v9 = vstv %s592_s12 }
  0x5d   :  { %s606_s19 = sld [smem:[#allocation7 + $0x282]]  ;;  %v124_v25 = vstv %s594_s13 }
  0x5e   :  { %s608_s1 = sld [smem:[#allocation7 + $0x300]]  ;;  %v126_v10 = vstv %s596_s14 }
  0x5f   :  { %s610_s20 = sld [smem:[#allocation7 + $0x301]]  ;;  %v128_v13 = vstv %s598_s15 }
  0x60   :  { %s612_s21 = sld [smem:[#allocation7 + $0x302]]  ;;  %v130_v17 = vstv %s600_s16 }
  0x61   :  { %s618_s22 = sld [smem:[#allocation7 + $0x380]]  ;;  %v132_v11 = vstv %s602_s17 }
  0x62   :  { %s620_s23 = sld [smem:[#allocation7 + $0x381]]  ;;  %v134_v14 = vstv %s604_s18 }
  0x63   :  { %s625_s24 = sld [smem:[#allocation7 + $0x382]]  ;;  %v136_v18 = vstv %s606_s19 }
  0x64   :  { %s634_s25 = sld [smem:[#allocation8]]  ;;  %v138_v8 = vstv %s608_s1 }
  0x65   :  { %s642_s0 = sld [smem:[#allocation8 + $0x1]]  ;;  %v140_v12 = vstv %s610_s20 }
  0x66   :  { %s650_s26 = sld [smem:[#allocation8 + $0x80]]  ;;  %v142_v15 = vstv %s612_s21 }
  0x67   :  { %v144_v16 = vstv %s618_s22  ;;  %s657_s27 = sld [smem:[#allocation8 + $0x81]] }
  0x68   :  { %v146_v19 = vstv %s620_s23  ;;  %s663_s3 = sld [smem:[#allocation10]]  ;;  %v185_v20 = vsel %vm184_vm5, %v138_v8, %v144_v16  ;;  %v213_v24 = vsel %vm212_vm8, %v138_v8, %v144_v16 }
  0x69   :  { %v148_v21 = vstv %s625_s24  ;;  %v186_v22 = vsel %vm183_vm4, %v132_v11, %v185_v20  ;;  %v192_v23 = vsel %vm184_vm5, %v140_v12, %v146_v19  ;;  %s683_s2 = sld [smem:[#allocation10 + $0x1]]  ;;  %v214_v36 = vsel %vm211_vm6, %v132_v11, %v213_v24 }
  0x6a   :  { %v187_v26 = vsel %vm182_vm3, %v126_v10, %v186_v22  ;;  %v193_v27 = vsel %vm183_vm4, %v134_v14, %v192_v23  ;;  %v199_v28 = vsel %vm184_vm5, %v142_v15, %v148_v21  ;;  %v150_v42 = vstv %s634_s25  ;;  %s161_s5 = sld [smem:[#allocation11]] }
  0x6b   :  { %v188_v30 = vsel %vm181_vm2, %v120_v7, %v187_v26  ;;  %v194_v31 = vsel %vm182_vm3, %v128_v13, %v193_v27  ;;  %v200_v32 = vsel %vm183_vm4, %v136_v18, %v199_v28  ;;  %v152_v43 = vstv %s642_s0  ;;  %s167_s28 = sld [smem:[#allocation13]] }
  0x6c   :  { %v189_v33 = vsel %vm180_vm1, %v114_v5, %v188_v30  ;;  %v195_v34 = vsel %vm181_vm2, %v122_v9, %v194_v31  ;;  %v201_v35 = vsel %vm182_vm3, %v130_v17, %v200_v32  ;;  %v154_v45 = vstv %s650_s26  ;;  %s352_s29 = sld [smem:[#allocation11 + $0x1]] }
  0x6d   :  { %v190_v39 = vsel %vm179_vm0, %v108_v4, %v189_v33  ;;  %v202_v40 = vsel %vm181_vm2, %v124_v25, %v201_v35  ;;  %v196_v44 = vsel %vm180_vm1, %v116_v6, %v195_v34  ;;  %v156_v46 = vstv %s657_s27  ;;  %s354_s30 = sld [smem:[#allocation13 + $0x1]] }
  0x6e   :  { %v203_v47 = vsel %vm180_vm1, %v118_v29, %v202_v40  ;;  %v215_v48 = vsel %vm210_vm7, %v126_v10, %v214_v36  ;;  %v158_v49 = vstv %s663_s3  ;;  %v191_v50 = vsel %vm178_vm9, %v102_v2, %v190_v39  ;;  %s353_s8 = sld [smem:[#allocation11 + $0x2]] }
  0x6f   :  { %v216_v51 = vsel %vm209_vm10, %v120_v7, %v215_v48  ;;  %v220_v52 = vsel %vm212_vm8, %v140_v12, %v146_v19  ;;  %v197_v53 = vsel %vm179_vm0, %v110_v38, %v196_v44  ;;  %v227_v56 = vsel %vm212_vm8, %v142_v15, %v148_v21  ;;  %s355_s9 = sld [smem:[#allocation13 + $0x2]] }
  0x70   :  { %v217_v54 = vsel %vm208_vm11, %v114_v5, %v216_v51  ;;  %v221_v55 = vsel %vm211_vm6, %v134_v14, %v220_v52  ;;  %v204_v57 = vsel %vm179_vm0, %v112_v41, %v203_v47  ;;  %v228_v60 = vsel %vm211_vm6, %v136_v18, %v227_v56 }
  0x71   :  { %v218_v58 = vsel %vm207_vm12, %v108_v4, %v217_v54  ;;  %v222_v59 = vsel %vm210_vm7, %v128_v13, %v221_v55  ;;  %v160_v61 = vstv %s683_s2  ;;  %v229_v5 = vsel %vm210_vm7, %v130_v17, %v228_v60 }
  0x72   :  { %v219_v62 = vsel %vm206_vm13, %v102_v2, %v218_v58  ;;  %v223_v63 = vsel %vm209_vm10, %v122_v9, %v222_v59  ;;  %v198_v4 = vsel %vm178_vm9, %v104_v3, %v197_v53  ;;  %v230_v8 = vsel %vm209_vm10, %v124_v25, %v229_v5 }
  0x73   :  { %v224_v7 = vsel %vm208_vm11, %v116_v6, %v223_v63  ;;  %v234_v10 = vmul.f32 %v191_v50, %v150_v42  ;;  %v205_v2 = vsel %vm178_vm9, %v106_v37, %v204_v57  ;;  %v231_v11 = vsel %vm208_vm11, %v118_v29, %v230_v8 }
  0x74   :  { %v225_v9 = vsel %vm207_vm12, %v110_v38, %v224_v7  ;;  %v235_v12 = vmul.f32 %v219_v62, %v152_v43  ;;  %v232_v6 = vsel %vm207_vm12, %v112_v41, %v231_v11  ;;  %v244_v14 = vmul.f32 %v191_v50, %v154_v45 }
  0x75   :  { %v226_v13 = vsel %vm206_vm13, %v104_v3, %v225_v9  ;;  %v245_v15 = vmul.f32 %v219_v62, %v156_v46  ;;  %v233_v0 = vsel %vm206_vm13, %v106_v37, %v232_v6  ;;  %v258_v17 = vmul.f32 %v198_v4, %v150_v42 }
  0x76   :  { %v236_v16 = vadd.f32 %v235_v12, %v234_v10  ;;  %v259_v18 = vmul.f32 %v226_v13, %v152_v43  ;;  %v268_v20 = vmul.f32 %v198_v4, %v154_v45  ;;  %v269_v21 = vmul.f32 %v226_v13, %v156_v46 }
  0x77   :  { %v246_v19 = vadd.f32 %v245_v15, %v244_v14  ;;  %v282_v22 = vmul.f32 %v205_v2, %v150_v42  ;;  %v283_v25 = vmul.f32 %v233_v0, %v152_v43  ;;  %v292_v26 = vmul.f32 %v205_v2, %v154_v45 }
  0x78   :  { %v237_v23 = vadd.f32 %v236_v16, %v158_v49  ;;  %v260_v24 = vadd.f32 %v259_v18, %v258_v17  ;;  %v270_v27 = vadd.f32 %v269_v21, %v268_v20  ;;  %v293_v28 = vmul.f32 %v233_v0, %v156_v46 }
  0x79   :  { %v247_v3 = vadd.f32 %v246_v19, %v160_v61  ;;  %v284_v31 = vadd.f32 %v283_v25, %v282_v22  ;;  %v162_v52 = vstv %s161_s5  ;;  %v168_v53 = vstv %s167_s28 }
  0x7a   :  { %v356_v29 = vmul.f32 -1.442695, %v237_v23  ;;  %v261_v30 = vadd.f32 %v260_v24, %v158_v49  ;;  %v271_v1 = vadd.f32 %v270_v27, %v160_v61  ;;  %v294_v33 = vadd.f32 %v293_v28, %v292_v26 }
  0x7b   :  { %v357_v32 = vmul.f32 -1.442695, %v247_v3  ;;  %v285_v35 = vadd.f32 %v284_v31, %v158_v49  ;;  %v164_v55 = vstv %s352_s29  ;;  %v174_v56 = vstv %s792_s6  ;;  %s313_s6 = sshll.u32 %s513_s11, 4  ;;  %s314_s6 = int_to_ptr.vmem [resolvable:$true] %s313_s6 }
  0x7c   :  { %371 = vpow2.f32 %v356_v29  ;;  %v358_v34 = vmul.f32 -1.442695, %v261_v30  ;;  %v359_v36 = vmul.f32 -1.442695, %v271_v1  ;;  %v295_v37 = vadd.f32 %v294_v33, %v160_v61  ;;  %s475_s12 = scalar_lea.vmem %s314_s6, 128  ;;  %p480_p3 = scmp.lt.s32.totalorder %s314_s6, %s314_s6 }
  0x7d   :  { %373 = vpow2.f32 %v357_v32  ;;  %v360_v38 = vmul.f32 -1.442695, %v285_v35  ;;  %v170_v60 = vstv %s354_s30  ;;  %v166_v7 = vstv %s353_s8  ;;  %p476_p2 = scmp.ne.s32.totalorder %s314_s6, %s475_s12  ;;  %p481_p4 = scmp.lt.s32.totalorder %s475_s12, %s475_s12 }
  0x7e   :  { %375 = vpow2.f32 %v358_v34  ;;  %v361_v39 = vmul.f32 -1.442695, %v295_v37  ;;  %v172_v9 = vstv %s355_s9 }
  0x7f   :  { %377 = vpow2.f32 %v359_v36  ;;  %p482_p5 = por %p481_p4, %p480_p3 }
  0x80   :  { %379 = vpow2.f32 %v360_v38 }
  0x81   :  { %381 = vpow2.f32 %v361_v39  ;;  %p483_p6 = pnand %p482_p5, %p476_p2 }
  0x89   :  { %v372_v40 = vpop.eup %371 }
  0x8a   :  { %v374_v41 = vpop.eup %373  ;;  %v241_v42 = vadd.f32 1.0, %v372_v40 }
  0x8b   :  { %v376_v43 = vpop.eup %375  ;;  %v251_v44 = vadd.f32 1.0, %v374_v41 }
  0x8c   :  { %v378_v45 = vpop.eup %377  ;;  %383 = vrcp.f32 %v241_v42  ;;  %v265_v46 = vadd.f32 1.0, %v376_v43 }
  0x8d   :  { %v380_v47 = vpop.eup %379  ;;  %385 = vrcp.f32 %v251_v44  ;;  %v275_v48 = vadd.f32 1.0, %v378_v45 }
  0x8e   :  { %v382_v49 = vpop.eup %381  ;;  %387 = vrcp.f32 %v265_v46  ;;  %v289_v50 = vadd.f32 1.0, %v380_v47 }
  0x8f   :  { %389 = vrcp.f32 %v275_v48  ;;  %v299_v51 = vadd.f32 1.0, %v382_v49 }
  0x90   :  { %391 = vrcp.f32 %v289_v50 }
  0x91   :  { %393 = vrcp.f32 %v299_v51 }
  0x99   :  { %v384_v54 = vpop.eup %383 }
  0x9a   :  { %v386_v57 = vpop.eup %385  ;;  %v254_v58 = vmul.f32 %v384_v54, %v162_v52 }
  0x9b   :  { %v388_v59 = vpop.eup %387  ;;  %v256_v61 = vmul.f32 %v386_v57, %v168_v53 }
  0x9c   :  { %v390_v62 = vpop.eup %389  ;;  %v255_v63 = vadd.f32 %v254_v58, %v174_v56  ;;  %v278_v5 = vmul.f32 %v388_v59, %v164_v55 }
  0x9d   :  { %v392_v4 = vpop.eup %391  ;;  %v280_v10 = vmul.f32 %v390_v62, %v170_v60 }
  0x9e   :  { %v257_v8 = vadd.f32 %v256_v61, %v255_v63  ;;  %v394_v2 = vpop.eup %393  ;;  %v302_v12 = vmul.f32 %v392_v4, %v166_v7 }
  0x9f   :  { %v304_v6 = vmul.f32 %v394_v2, %v172_v9 }
  0xa0   :  { %v279_v11 = vadd.f32 %v278_v5, %v257_v8 }
  0xa2   :  { %v281_v13 = vadd.f32 %v280_v10, %v279_v11 }
  0xa4   :  { %v303_v14 = vadd.f32 %v302_v12, %v281_v13 }
  0xa6   :  { %v305_v15 = vadd.f32 %v304_v6, %v303_v14 }
  0xa8   :  { %306 = vst [vmem:[#allocation14] sm:$0xff] %v305_v15 }
  0xa9   :  { %486 = shalt.err (!%p483_p6)
}
  0xaa   :  { %316 = dma.vmem_to_hbm [thread:$0]  %s314_s6, 128, %s793_s7, [#allocation5]  }
  0xab   :  { %503 = dma.done.wait [#allocation5], 128  }
  0xac   :  { %504 = vsyncadd [#allocation5], 4294967168 }
  0xad   :  { %320 = vsyncpa [#allocation4], 1 }
  0xae   :  { %321 = vsyncpa [#allocation5], 1 }
  0xaf   :  { %322 = vsyncpa [#allocation6], 1 }
  0xb0   :  { %323 = vsyncpa [#allocation9], 1 }
  0xb1   :  { %324 = vsyncpa [#allocation12], 1 }

</bundles_post_ra>
